<compile_context>
chip_gen: v5e
topology: v5e:2x2
jax: 0.10.0
libtpu: 0.0.40
codegen_flags: <defaults>
</compile_context>

<pallas_src>
import functools

import jax
import jax.numpy as jnp
from jax.experimental import pallas as pl
from jax.experimental.pallas import tpu as pltpu


def _make_kernel(use_bf16_matmul):
    mm_dtype = jnp.bfloat16 if use_bf16_matmul else jnp.float32

    def kernel(x_ref, mask_ref, w1t_ref, b1_ref, w2t_ref, b2_ref, o_ref):
        # x_ref:    (TB, S, D) f32 block of enc_outputs
        # mask_ref: (TB, S, D) int8 block (nonzero == masked)
        # w1t_ref:  (D, D)  W1 transposed (x @ W1^T), f32 or bf16
        # b1_ref:   (1, D)  f32
        # w2t_ref:  (D, D)  W2 transposed, f32 or bf16
        # b2_ref:   (1, D)  f32
        # o_ref:    (TB, S, D) f32
        TB, S, D = x_ref.shape
        x = x_ref[...]                                  # (TB, S, D) f32
        xf = x.reshape(TB * S, D)                       # flatten -> big-M matmul

        # attn = w_1(enc_outputs)  (flattened, large-M GEMM on the MXU)
        a = jnp.dot(xf.astype(mm_dtype), w1t_ref[...],
                    preferred_element_type=jnp.float32) + b1_ref[...]

        # attn = softmax(attn, dim=-1)  -- VPU/EUP math kept in f32 on all gens
        a = a - jnp.max(a, axis=-1, keepdims=True)
        e = jnp.exp(a)
        p = e / jnp.sum(e, axis=-1, keepdims=True)

        # attn = dropout(attn) -> identity (eval mode)
        # attn = attn.masked_fill(mask, -inf)   (AFTER softmax, as in reference)
        p = jnp.where(mask_ref[...].reshape(TB * S, D) != 0, -jnp.inf, p)

        # attnT = torch.bmm(attn, enc_outputs)  (per-batch matmul on the MXU)
        y = jnp.einsum(
            "bsk,bkd->bsd",
            p.reshape(TB, S, D).astype(mm_dtype),
            x.astype(mm_dtype),
            preferred_element_type=jnp.float32,
        )

        # attnT = w_2(attnT)  (flattened again)
        o = jnp.dot(y.reshape(TB * S, D).astype(mm_dtype), w2t_ref[...],
                    preferred_element_type=jnp.float32) + b2_ref[...]
        o_ref[...] = o.reshape(TB, S, D).astype(o_ref.dtype)

    return kernel


def _vmem_budget_bytes():
    """Generation-aware scoped-VMEM budget (~75% of per-core VMEM capacity)."""
    cap = None
    try:
        cap = getattr(pltpu.get_tpu_info(), "vmem_capacity_bytes", None)
    except Exception:
        cap = None
    if not cap:
        cap = 64 * 1024 * 1024      # safe floor (v7x per-TC VMEM)
    budget = int(cap) * 3 // 4
    # Clamp: never below the 32 MiB v7x-safe floor, never above 96 MiB.
    return max(32 * 1024 * 1024, min(budget, 96 * 1024 * 1024))


def _choose_batch_block(B, S, D, budget):
    """Batch elements per grid step.

    Constraints:
      * double-buffered x(f32)+mask(i8)+out(f32) blocks, single-buffered
        weights, and ~4 f32-sized in-kernel temporaries fit in `budget`;
      * at most ~2048 flattened MXU rows per step (overhead amortization
        plateaus there);
      * at least min(B, 4) grid steps so the pipeline has work to hide DMA
        behind and v7x can split the parallel axis across its two TCs,
        preferring an even step count.
    """
    pipelined_per_batch = 2 * S * D * (4 + 1 + 4)   # 2x-buffered x + mask + out
    temps_per_batch = 4 * S * D * 4                 # a/e/p, y, o, mask widening
    bytes_per_batch = pipelined_per_batch + temps_per_batch
    weight_bytes = 2 * (D * D * 4 + D * 4)          # single-buffered W^T + bias

    cap_vmem = max(1, (budget - weight_bytes) // bytes_per_batch)
    cap_rows = max(1, 2048 // max(S, 1))            # <= ~2048 flattened rows/step
    min_steps = min(B, 4)
    cap_grid = max(1, B // min_steps)               # keep >= min(B,4) grid steps
    cap = int(max(1, min(cap_vmem, cap_rows, cap_grid, B)))

    best_any, best_even = 1, None
    for cand in range(1, cap + 1):                  # divisors of B only
        if B % cand == 0:
            best_any = cand
            if (B // cand) % 2 == 0:
                best_even = cand
    # Prefer an even number of grid steps if it costs at most 2x in block size.
    if best_even is not None and best_even * 2 >= best_any:
        return best_even
    return best_any


def _build_in_specs(TB, S, D, single_buffer_weights):
    data_specs = [
        pl.BlockSpec((TB, S, D), lambda b: (b, 0, 0)),   # enc_outputs (f32)
        pl.BlockSpec((TB, S, D), lambda b: (b, 0, 0)),   # mask (int8)
    ]
    weight_shapes = [(D, D), (1, D), (D, D), (1, D)]     # W1^T, b1, W2^T, b2
    weight_specs = []
    for shp in weight_shapes:
        if single_buffer_weights:
            spec = pl.BlockSpec(shp, lambda b: (0, 0),
                                pipeline_mode=pl.Buffered(1))
        else:
            spec = pl.BlockSpec(shp, lambda b: (0, 0))
        weight_specs.append(spec)
    return data_specs + weight_specs


def model_forward(enc_outputs, mask, w1, b1, w2, b2, use_bf16_matmul=None):
    """Pallas implementation of Model.forward.

    enc_outputs: (B, S, D) float32, with S == D (bmm constraint of the module)
    mask:        (B, S, D) integer/bool (nonzero == masked)
    w1, w2:      (D, D) float32 (PyTorch Linear weight layout: out x in)
    b1, b2:      (D,)   float32
    """
    B, S, D = enc_outputs.shape
    assert S == D, "torch.bmm(attn, enc_outputs) requires seq_len == d_model"

    if use_bf16_matmul is None:
        # bf16 MXU inputs only pay off in the compute-bound (large-D) regime;
        # small-D shapes stay in f32 and keep exact reference numerics.
        use_bf16_matmul = D >= 256
    mm_dtype = jnp.bfloat16 if use_bf16_matmul else jnp.float32

    # Layout plumbing kept outside the kernel.
    enc_outputs = enc_outputs.astype(jnp.float32)
    mask_i8 = (mask != 0).astype(jnp.int8)               # 4x less DMA than int32
    w1t = jnp.transpose(w1).astype(mm_dtype)
    w2t = jnp.transpose(w2).astype(mm_dtype)
    b1_2d = b1.reshape(1, D).astype(jnp.float32)
    b2_2d = b2.reshape(1, D).astype(jnp.float32)

    budget = _vmem_budget_bytes()
    TB = _choose_batch_block(B, S, D, budget)
    grid = (B // TB,)

    out_spec = pl.BlockSpec((TB, S, D), lambda b: (b, 0, 0))
    out_shape = jax.ShapeDtypeStruct((B, S, D), jnp.float32)
    kernel = _make_kernel(use_bf16_matmul)
    compiler_params = pltpu.CompilerParams(
        dimension_semantics=("parallel",),
        vmem_limit_bytes=budget,
    )

    last_err = None
    # Try single-buffered weights first (pipeline_mode=pl.Buffered(1)); fall
    # back to default double-buffering if this JAX/Mosaic rejects it.
    for single_buf in (True, False):
        try:
            in_specs = _build_in_specs(TB, S, D, single_buf)
            grid_spec = pltpu.PrefetchScalarGridSpec(
                num_scalar_prefetch=0,
                grid=grid,
                in_specs=in_specs,
                out_specs=out_spec,
            )
            return pl.pallas_call(
                kernel,
                out_shape=out_shape,
                grid_spec=grid_spec,
                compiler_params=compiler_params,
            )(enc_outputs, mask_i8, w1t, b1_2d, w2t, b2_2d)
        except Exception as e:  # noqa: BLE001 - retry without Buffered(1)
            last_err = e
    raise last_err


if __name__ == "__main__":
    # Small shapes consistent with the module: batch=2, d_model=32,
    # seq_len == d_model == 32 (required for the bmm in forward()).
    B, D = 2, 32

    key = jax.random.PRNGKey(0)
    k_x, k_m, k_w1, k_b1, k_w2, k_b2 = jax.random.split(key, 6)

    enc_outputs = jax.random.normal(k_x, (B, D, D), dtype=jnp.float32)
    memory_key_padding_mask = (
        jax.random.uniform(k_m, (B, D, D)) < 0.5
    ).astype(jnp.int32)

    # Deterministic Linear(d_model, d_model) init (torch-style uniform bound).
    bound = 1.0 / (D ** 0.5)
    w1 = jax.random.uniform(k_w1, (D, D), jnp.float32, -bound, bound)
    b1 = jax.random.uniform(k_b1, (D,), jnp.float32, -bound, bound)
    w2 = jax.random.uniform(k_w2, (D, D), jnp.float32, -bound, bound)
    b2 = jax.random.uniform(k_b2, (D,), jnp.float32, -bound, bound)

    # TODO(synk): training-mode Dropout(0.1) (stateful RNG mask) is not
    # reproduced; the kernel implements eval-mode (identity) dropout.
    out = model_forward(enc_outputs, memory_key_padding_mask, w1, b1, w2, b2)
    jax.block_until_ready(out)
    print("KERNEL_OK")
</pallas_src>

<mosaic_0001>
module attributes {stable_mosaic.version = 11 : i64} {
  func.func @kernel(%arg0: i32, %arg1: memref<1x32x32xf32, #tpu.memory_space<vmem>>, %arg2: memref<1x32x32xi8, #tpu.memory_space<vmem>>, %arg3: memref<32x32xf32, #tpu.memory_space<vmem>>, %arg4: memref<1x32xf32, #tpu.memory_space<vmem>>, %arg5: memref<32x32xf32, #tpu.memory_space<vmem>>, %arg6: memref<1x32xf32, #tpu.memory_space<vmem>>, %arg7: memref<1x32x32xf32, #tpu.memory_space<vmem>>) attributes {dimension_semantics = [#tpu.dimension_semantics<parallel>], iteration_bounds = array<i64: 2>, scalar_prefetch = 0 : i64, scratch_operands = 0 : i64, tpu.core_type = #tpu.core_type<tc>, window_params = [{transform_indices = @transform_0, window_bounds = array<i64: 1, 32, 32>}, {transform_indices = @transform_1, window_bounds = array<i64: 1, 32, 32>}, {pipeline_mode = #tpu.pipeline_mode<synchronous>, transform_indices = @transform_2, window_bounds = array<i64: 32, 32>}, {pipeline_mode = #tpu.pipeline_mode<synchronous>, transform_indices = @transform_3, window_bounds = array<i64: 1, 32>}, {pipeline_mode = #tpu.pipeline_mode<synchronous>, transform_indices = @transform_4, window_bounds = array<i64: 32, 32>}, {pipeline_mode = #tpu.pipeline_mode<synchronous>, transform_indices = @transform_5, window_bounds = array<i64: 1, 32>}, {transform_indices = @transform_6, window_bounds = array<i64: 1, 32, 32>}]} {
    %c0 = arith.constant 0 : index
    %c0_0 = arith.constant 0 : index
    %c0_1 = arith.constant 0 : index
    %0 = vector.load %arg1[%c0, %c0_0, %c0_1] : memref<1x32x32xf32, #tpu.memory_space<vmem>>, vector<1x32x32xf32>
    %1 = vector.shape_cast %0 : vector<1x32x32xf32> to vector<32x32xf32>
    %c0_2 = arith.constant 0 : index
    %c0_3 = arith.constant 0 : index
    %2 = vector.load %arg3[%c0_2, %c0_3] : memref<32x32xf32, #tpu.memory_space<vmem>>, vector<32x32xf32>
    %cst = arith.constant dense<0.000000e+00> : vector<32x32xf32>
    %3 = tpu.matmul %1, %2, %cst {dimension_numbers = #tpu.dot_dimension_numbers<[1], [0], [0], [1], [0, 0, 1, 1], [], []>} : vector<32x32xf32>, vector<32x32xf32>, vector<32x32xf32> -> vector<32x32xf32>
    %c0_4 = arith.constant 0 : index
    %c0_5 = arith.constant 0 : index
    %4 = vector.load %arg4[%c0_4, %c0_5] : memref<1x32xf32, #tpu.memory_space<vmem>>, vector<1x32xf32>
    %5 = vector.broadcast %4 : vector<1x32xf32> to vector<32x32xf32>
    %6 = arith.addf %3, %5 : vector<32x32xf32>
    %cst_6 = arith.constant dense<0xFF800000> : vector<32xf32>
    %7 = vector.multi_reduction <maximumf>, %6, %cst_6 [1] : vector<32x32xf32> to vector<32xf32>
    %8 = vector.shape_cast %7 : vector<32xf32> to vector<32x1xf32>
    %9 = vector.broadcast %8 : vector<32x1xf32> to vector<32x32xf32>
    %10 = arith.subf %6, %9 : vector<32x32xf32>
    %11 = math.exp %10 : vector<32x32xf32>
    %cst_7 = arith.constant dense<0.000000e+00> : vector<32xf32>
    %12 = vector.multi_reduction <add>, %11, %cst_7 [1] : vector<32x32xf32> to vector<32xf32>
    %13 = vector.shape_cast %12 : vector<32xf32> to vector<32x1xf32>
    %14 = vector.broadcast %13 : vector<32x1xf32> to vector<32x32xf32>
    %15 = arith.divf %11, %14 : vector<32x32xf32>
    %c0_8 = arith.constant 0 : index
    %c0_9 = arith.constant 0 : index
    %c0_10 = arith.constant 0 : index
    %16 = vector.load %arg2[%c0_8, %c0_9, %c0_10] : memref<1x32x32xi8, #tpu.memory_space<vmem>>, vector<1x32x32xi8>
    %17 = vector.shape_cast %16 : vector<1x32x32xi8> to vector<32x32xi8>
    %c0_i8 = arith.constant 0 : i8
    %18 = vector.broadcast %c0_i8 : i8 to vector<32x32xi8>
    %19 = arith.cmpi ne, %17, %18 : vector<32x32xi8>
    %cst_11 = arith.constant 0xFF800000 : f32
    %20 = vector.broadcast %cst_11 : f32 to vector<32x32xf32>
    %21 = arith.select %19, %20, %15 : vector<32x32xi1>, vector<32x32xf32>
    %22 = vector.shape_cast %21 : vector<32x32xf32> to vector<1x32x32xf32>
    "tpu.trace_start"() <{level = 10 : i32, message = "bsk,bkd->bsd"}> : () -> ()
    %cst_12 = arith.constant dense<0.000000e+00> : vector<1x32x32xf32>
    %23 = tpu.matmul %22, %0, %cst_12 {dimension_numbers = #tpu.dot_dimension_numbers<[2], [1], [1], [2], [0, 0, 0, 1, 1, 2], [0], [0]>} : vector<1x32x32xf32>, vector<1x32x32xf32>, vector<1x32x32xf32> -> vector<1x32x32xf32>
    "tpu.trace_stop"() : () -> ()
    %24 = vector.shape_cast %23 : vector<1x32x32xf32> to vector<32x32xf32>
    %c0_13 = arith.constant 0 : index
    %c0_14 = arith.constant 0 : index
    %25 = vector.load %arg5[%c0_13, %c0_14] : memref<32x32xf32, #tpu.memory_space<vmem>>, vector<32x32xf32>
    %cst_15 = arith.constant dense<0.000000e+00> : vector<32x32xf32>
    %26 = tpu.matmul %24, %25, %cst_15 {dimension_numbers = #tpu.dot_dimension_numbers<[1], [0], [0], [1], [0, 0, 1, 1], [], []>} : vector<32x32xf32>, vector<32x32xf32>, vector<32x32xf32> -> vector<32x32xf32>
    %c0_16 = arith.constant 0 : index
    %c0_17 = arith.constant 0 : index
    %27 = vector.load %arg6[%c0_16, %c0_17] : memref<1x32xf32, #tpu.memory_space<vmem>>, vector<1x32xf32>
    %28 = vector.broadcast %27 : vector<1x32xf32> to vector<32x32xf32>
    %29 = arith.addf %26, %28 : vector<32x32xf32>
    %30 = vector.shape_cast %29 : vector<32x32xf32> to vector<1x32x32xf32>
    %c0_18 = arith.constant 0 : index
    %c0_19 = arith.constant 0 : index
    %c0_20 = arith.constant 0 : index
    %31 = vector.load %arg7[%c0_18, %c0_19, %c0_20] : memref<1x32x32xf32, #tpu.memory_space<vmem>>, vector<1x32x32xf32>
    tpu.vector_store %arg7[%c0_18, %c0_19, %c0_20], %30 {strides = array<i32>} : memref<1x32x32xf32, #tpu.memory_space<vmem>>, vector<1x32x32xf32>,
    return
  }
  func.func @transform_0(%arg0: i32) -> (i32, i32, i32) {
    %c0_i32 = arith.constant 0 : i32
    %c0_i32_0 = arith.constant 0 : i32
    %c0_i32_1 = arith.constant 0 : i32
    return %arg0, %c0_i32, %c0_i32_0 : i32, i32, i32
  }
  func.func @transform_1(%arg0: i32) -> (i32, i32, i32) {
    %c0_i32 = arith.constant 0 : i32
    %c0_i32_0 = arith.constant 0 : i32
    %c0_i32_1 = arith.constant 0 : i32
    return %arg0, %c0_i32, %c0_i32_0 : i32, i32, i32
  }
  func.func @transform_2(%arg0: i32) -> (i32, i32) {
    %c0_i32 = arith.constant 0 : i32
    %c0_i32_0 = arith.constant 0 : i32
    %c0_i32_1 = arith.constant 0 : i32
    return %c0_i32, %c0_i32_0 : i32, i32
  }
  func.func @transform_3(%arg0: i32) -> (i32, i32) {
    %c0_i32 = arith.constant 0 : i32
    %c0_i32_0 = arith.constant 0 : i32
    %c0_i32_1 = arith.constant 0 : i32
    return %c0_i32, %c0_i32_0 : i32, i32
  }
  func.func @transform_4(%arg0: i32) -> (i32, i32) {
    %c0_i32 = arith.constant 0 : i32
    %c0_i32_0 = arith.constant 0 : i32
    %c0_i32_1 = arith.constant 0 : i32
    return %c0_i32, %c0_i32_0 : i32, i32
  }
  func.func @transform_5(%arg0: i32) -> (i32, i32) {
    %c0_i32 = arith.constant 0 : i32
    %c0_i32_0 = arith.constant 0 : i32
    %c0_i32_1 = arith.constant 0 : i32
    return %c0_i32, %c0_i32_0 : i32, i32
  }
  func.func @transform_6(%arg0: i32) -> (i32, i32, i32) {
    %c0_i32 = arith.constant 0 : i32
    %c0_i32_0 = arith.constant 0 : i32
    %c0_i32_1 = arith.constant 0 : i32
    return %arg0, %c0_i32, %c0_i32_0 : i32, i32, i32
  }
}

module attributes {stable_mosaic.version = 11 : i64} {
  func.func @kernel(%arg0: i32, %arg1: memref<1x32x32xf32, #tpu.memory_space<vmem>>, %arg2: memref<1x32x32xi8, #tpu.memory_space<vmem>>, %arg3: memref<32x32xf32, #tpu.memory_space<vmem>>, %arg4: memref<1x32xf32, #tpu.memory_space<vmem>>, %arg5: memref<32x32xf32, #tpu.memory_space<vmem>>, %arg6: memref<1x32xf32, #tpu.memory_space<vmem>>, %arg7: memref<1x32x32xf32, #tpu.memory_space<vmem>>) attributes {dimension_semantics = [#tpu.dimension_semantics<parallel>], iteration_bounds = array<i64: 2>, scalar_prefetch = 0 : i64, scratch_operands = 0 : i64, tpu.core_type = #tpu.core_type<tc>, window_params = [{transform_indices = @transform_0, window_bounds = array<i64: 1, 32, 32>}, {transform_indices = @transform_1, window_bounds = array<i64: 1, 32, 32>}, {pipeline_mode = #tpu.pipeline_mode<synchronous>, transform_indices = @transform_2, window_bounds = array<i64: 32, 32>}, {pipeline_mode = #tpu.pipeline_mode<synchronous>, transform_indices = @transform_3, window_bounds = array<i64: 1, 32>}, {pipeline_mode = #tpu.pipeline_mode<synchronous>, transform_indices = @transform_4, window_bounds = array<i64: 32, 32>}, {pipeline_mode = #tpu.pipeline_mode<synchronous>, transform_indices = @transform_5, window_bounds = array<i64: 1, 32>}, {transform_indices = @transform_6, window_bounds = array<i64: 1, 32, 32>}]} {
    %c0 = arith.constant 0 : index
    %c0_0 = arith.constant 0 : index
    %c0_1 = arith.constant 0 : index
    %0 = vector.load %arg1[%c0, %c0_0, %c0_1] : memref<1x32x32xf32, #tpu.memory_space<vmem>>, vector<1x32x32xf32>
    %1 = vector.shape_cast %0 : vector<1x32x32xf32> to vector<32x32xf32>
    %c0_2 = arith.constant 0 : index
    %c0_3 = arith.constant 0 : index
    %2 = vector.load %arg3[%c0_2, %c0_3] : memref<32x32xf32, #tpu.memory_space<vmem>>, vector<32x32xf32>
    %cst = arith.constant dense<0.000000e+00> : vector<32x32xf32>
    %3 = tpu.matmul %1, %2, %cst {dimension_numbers = #tpu.dot_dimension_numbers<[1], [0], [0], [1], [0, 0, 1, 1], [], []>} : vector<32x32xf32>, vector<32x32xf32>, vector<32x32xf32> -> vector<32x32xf32>
    %c0_4 = arith.constant 0 : index
    %c0_5 = arith.constant 0 : index
    %4 = vector.load %arg4[%c0_4, %c0_5] : memref<1x32xf32, #tpu.memory_space<vmem>>, vector<1x32xf32>
    %5 = vector.broadcast %4 : vector<1x32xf32> to vector<32x32xf32>
    %6 = arith.addf %3, %5 : vector<32x32xf32>
    %cst_6 = arith.constant dense<0xFF800000> : vector<32xf32>
    %7 = vector.multi_reduction <maximumf>, %6, %cst_6 [1] : vector<32x32xf32> to vector<32xf32>
    %8 = vector.shape_cast %7 : vector<32xf32> to vector<32x1xf32>
    %9 = vector.broadcast %8 : vector<32x1xf32> to vector<32x32xf32>
    %10 = arith.subf %6, %9 : vector<32x32xf32>
    %11 = math.exp %10 : vector<32x32xf32>
    %cst_7 = arith.constant dense<0.000000e+00> : vector<32xf32>
    %12 = vector.multi_reduction <add>, %11, %cst_7 [1] : vector<32x32xf32> to vector<32xf32>
    %13 = vector.shape_cast %12 : vector<32xf32> to vector<32x1xf32>
    %14 = vector.broadcast %13 : vector<32x1xf32> to vector<32x32xf32>
    %15 = arith.divf %11, %14 : vector<32x32xf32>
    %c0_8 = arith.constant 0 : index
    %c0_9 = arith.constant 0 : index
    %c0_10 = arith.constant 0 : index
    %16 = vector.load %arg2[%c0_8, %c0_9, %c0_10] : memref<1x32x32xi8, #tpu.memory_space<vmem>>, vector<1x32x32xi8>
    %17 = vector.shape_cast %16 : vector<1x32x32xi8> to vector<32x32xi8>
    %c0_i8 = arith.constant 0 : i8
    %18 = vector.broadcast %c0_i8 : i8 to vector<32x32xi8>
    %19 = arith.cmpi ne, %17, %18 : vector<32x32xi8>
    %cst_11 = arith.constant 0xFF800000 : f32
    %20 = vector.broadcast %cst_11 : f32 to vector<32x32xf32>
    %21 = arith.select %19, %20, %15 : vector<32x32xi1>, vector<32x32xf32>
    %22 = vector.shape_cast %21 : vector<32x32xf32> to vector<1x32x32xf32>
    "tpu.trace_start"() <{level = 10 : i32, message = "bsk,bkd->bsd"}> : () -> ()
    %cst_12 = arith.constant dense<0.000000e+00> : vector<1x32x32xf32>
    %23 = tpu.matmul %22, %0, %cst_12 {dimension_numbers = #tpu.dot_dimension_numbers<[2], [1], [1], [2], [0, 0, 0, 1, 1, 2], [0], [0]>} : vector<1x32x32xf32>, vector<1x32x32xf32>, vector<1x32x32xf32> -> vector<1x32x32xf32>
    "tpu.trace_stop"() : () -> ()
    %24 = vector.shape_cast %23 : vector<1x32x32xf32> to vector<32x32xf32>
    %c0_13 = arith.constant 0 : index
    %c0_14 = arith.constant 0 : index
    %25 = vector.load %arg5[%c0_13, %c0_14] : memref<32x32xf32, #tpu.memory_space<vmem>>, vector<32x32xf32>
    %cst_15 = arith.constant dense<0.000000e+00> : vector<32x32xf32>
    %26 = tpu.matmul %24, %25, %cst_15 {dimension_numbers = #tpu.dot_dimension_numbers<[1], [0], [0], [1], [0, 0, 1, 1], [], []>} : vector<32x32xf32>, vector<32x32xf32>, vector<32x32xf32> -> vector<32x32xf32>
    %c0_16 = arith.constant 0 : index
    %c0_17 = arith.constant 0 : index
    %27 = vector.load %arg6[%c0_16, %c0_17] : memref<1x32xf32, #tpu.memory_space<vmem>>, vector<1x32xf32>
    %28 = vector.broadcast %27 : vector<1x32xf32> to vector<32x32xf32>
    %29 = arith.addf %26, %28 : vector<32x32xf32>
    %30 = vector.shape_cast %29 : vector<32x32xf32> to vector<1x32x32xf32>
    %c0_18 = arith.constant 0 : index
    %c0_19 = arith.constant 0 : index
    %c0_20 = arith.constant 0 : index
    %31 = vector.load %arg7[%c0_18, %c0_19, %c0_20] : memref<1x32x32xf32, #tpu.memory_space<vmem>>, vector<1x32x32xf32>
    tpu.vector_store %arg7[%c0_18, %c0_19, %c0_20], %30 {strides = array<i32>} : memref<1x32x32xf32, #tpu.memory_space<vmem>>, vector<1x32x32xf32>,
    return
  }
  func.func @transform_0(%arg0: i32) -> (i32, i32, i32) {
    %c0_i32 = arith.constant 0 : i32
    %c0_i32_0 = arith.constant 0 : i32
    %c0_i32_1 = arith.constant 0 : i32
    return %arg0, %c0_i32, %c0_i32_0 : i32, i32, i32
  }
  func.func @transform_1(%arg0: i32) -> (i32, i32, i32) {
    %c0_i32 = arith.constant 0 : i32
    %c0_i32_0 = arith.constant 0 : i32
    %c0_i32_1 = arith.constant 0 : i32
    return %arg0, %c0_i32, %c0_i32_0 : i32, i32, i32
  }
  func.func @transform_2(%arg0: i32) -> (i32, i32) {
    %c0_i32 = arith.constant 0 : i32
    %c0_i32_0 = arith.constant 0 : i32
    %c0_i32_1 = arith.constant 0 : i32
    return %c0_i32, %c0_i32_0 : i32, i32
  }
  func.func @transform_3(%arg0: i32) -> (i32, i32) {
    %c0_i32 = arith.constant 0 : i32
    %c0_i32_0 = arith.constant 0 : i32
    %c0_i32_1 = arith.constant 0 : i32
    return %c0_i32, %c0_i32_0 : i32, i32
  }
  func.func @transform_4(%arg0: i32) -> (i32, i32) {
    %c0_i32 = arith.constant 0 : i32
    %c0_i32_0 = arith.constant 0 : i32
    %c0_i32_1 = arith.constant 0 : i32
    return %c0_i32, %c0_i32_0 : i32, i32
  }
  func.func @transform_5(%arg0: i32) -> (i32, i32) {
    %c0_i32 = arith.constant 0 : i32
    %c0_i32_0 = arith.constant 0 : i32
    %c0_i32_1 = arith.constant 0 : i32
    return %c0_i32, %c0_i32_0 : i32, i32
  }
  func.func @transform_6(%arg0: i32) -> (i32, i32, i32) {
    %c0_i32 = arith.constant 0 : i32
    %c0_i32_0 = arith.constant 0 : i32
    %c0_i32_1 = arith.constant 0 : i32
    return %arg0, %c0_i32, %c0_i32_0 : i32, i32, i32
  }
}

</mosaic_0001>

<bundles_post_ra>
// kernel: tpu_custom_call.1
= control target key start
LH: loop header
LB: loop body
LE: loop exit
PB: predicated region body
PF: predicated region fallthrough
CT: control target
= control target key end

     0   :  { %s1388_s0 = inlined_call_operand.hbm [shape: f32[2,32,32], index: 0, kind: input, shape index: {}]   ;;  %s1389_s1 = inlined_call_operand.hbm [shape: s8[2,32,32], index: 1, kind: input, shape index: {}]   ;;  %s1390_s2 = inlined_call_operand.hbm [shape: f32[32,32], index: 2, kind: input, shape index: {}]   ;;  %s1391_s3 = inlined_call_operand.vmem [shape: f32[1,32], index: 3, kind: input, shape index: {}]   ;;  %s1392_s4 = inlined_call_operand.hbm [shape: f32[32,32], index: 4, kind: input, shape index: {}]   ;;  %s1393_s5 = inlined_call_operand.vmem [shape: f32[1,32], index: 5, kind: input, shape index: {}]   ;;  %s1394_s6 = inlined_call_operand.hbm [shape: f32[2,32,32], index: 6, kind: output, shape index: {}]  }
   0x1   :  { %1400 = sst [smem:[#allocation19_spill]] %s1390_s2 }
   0x2   :  { %1401 = sst [smem:[#allocation20_spill]] %s1392_s4 }
   0x3   :  { %11 = vsyncpa [#allocation3], 0 }
   0x4   :  { %13 = vsyncpa [#allocation3 + $0x1], 0 }
   0x5   :  { %14 = vsyncpa [#allocation6], 0 }
   0x6   :  { %16 = vsyncpa [#allocation6 + $0x1], 0 }
   0x7   :  { %17 = vsyncpa [#allocation9], 0 }
   0x8   :  { %18 = vsyncpa [#allocation4], 0 }
   0x9   :  { %20 = vsyncpa [#allocation4 + $0x1], 0  ;;  %s1140_s21 = smov 0   ;;  %s1142_s22 = smov 0  }
   0xa   :  { %s1144_s23 = smov 0   ;;  %s1146_s24 = smov 0  }
   0xb LB: > { %1402 = sst [smem:[#allocation16_spill]] %s1092_s23  ;;  %s1161_s25 = sadd.s32 4294967295, %s1096_s24   ;;  %s1096_s24 = sphi %s1146_s24, %s1415_s24   ;;  %s1092_s23 = sphi %s1144_s23, %s1417_s23   ;;  %s1088_s22 = sphi %s1142_s22, %s1419_s22   ;;  %s1084_s21 = sphi %s1140_s21, %s1418_s21  }
   0xc   : > { %s756_s26 = sadd.s32 4294967294, %s1096_s24   ;;  %p46_p0 = scmp.ne.s32.totalorder %s1088_s22, %s1084_s21 }
   0xd   : > { %p47_p1 = scmp.eq.s32.totalorder %s1161_s25, 0  ;;  %p180_p2 = scmp.eq.s32.totalorder %s1161_s25, 1 }
   0xe   : > { %p186_p3 = scmp.eq.s32.totalorder %s756_s26, 1  ;;  %p757_p5 = scmp.ge.s32.totalorder %s1096_s24, 1 }
   0xf   : > { %p1170_p4 = por %p47_p1, %p46_p0  ;;  %p193_p7 = scmp.lt.s32.totalorder %s1096_s24, 3 }
  0x10   : > { %p1175_p6 = por %p186_p3, %p46_p0  ;;  %s1405_s2 = sld [smem:[#allocation19_spill]] }
  0x11   : > { %p1183_p8 = pnand %p757_p5, %p193_p7  ;;  %s1098_s9 = smov [#allocation7]  }
  0x12   : > { %s206_s10 = sshll.u32 %s1098_s9, 4  ;;  %s1407_s4 = sld [smem:[#allocation20_spill]]  ;;  %s207_s10 = int_to_ptr.vmem [resolvable:$true] %s206_s10 }
  0x13   : > { %p817_p9 = pneg %p1183_p8  ;;  %s1395_s14 = smov 128  }
  0x14   : > { %s1396_s15 = smov 8   ;;  %s1101_s16 = smov [#allocation8]  }
  0x15   : > { %p818_p10 = pnand %p817_p9, %p47_p1  ;;  %s223_s17 = sshll.u32 %s1101_s16, 4  ;;  %s224_s17 = int_to_ptr.vmem [resolvable:$true] %s223_s17 }
  0x16   : > { %s204_s7 = sshll.u32 %s1405_s2, 4  ;;  %s1202_s18 = sadd.s32 1, %s1096_s24   ;;  %s205_s7 = int_to_ptr.hbm [resolvable:$true] %s204_s7 }
  0x17   : > { %820 = dma.hbm_to_vmem [thread:$0]  (!%p818_p10), %s205_s7, 512, %s207_s10, [#allocation6], %s1395_s14, %s1395_s14, %s1396_s15  }
  0x18   : > { %s221_s13 = sshll.u32 %s1407_s4, 4  ;;  %1408 = sst [smem:[#allocation17_spill]] %s1202_s18  ;;  %s222_s13 = int_to_ptr.hbm [resolvable:$true] %s221_s13 }
  0x19   : > { %823 = dma.hbm_to_vmem [thread:$0]  (!%p818_p10), %s222_s13, 512, %s224_s17, [#allocation9], %s1395_s14, %s1395_s14, %s1396_s15  }
  0x1a   : > { %s33_s19 = sadd.s32 1, %s1092_s23  ;;  %s30_s20 = ssub.s32 %s1096_s24, %s1202_s18 }
  0x1b   : > { %p40_p12 = scmp.ne.s32.totalorder %s1092_s23, %s1088_s22  ;;  %p31_p13 = scmp.eq.s32.totalorder %s30_s20, 0 }
  0x1c   : > { %p41_p0 = scmp.eq.s32.totalorder %s1096_s24, 0  ;;  %p837_p5 = scmp.lt.s32.totalorder %s1096_s24, 2 }
  0x1d   : > { %p1212_p3 = por %p180_p2, %p40_p12  ;;  %s1221_s30 = sand.u32 1, %s1092_s23  }
  0x1e   : > { %s1218_s29 = scalar_select %p31_p13, %s1092_s23, %s33_s19  }
  0x1f   : > { %p42_p7 = por %p41_p0, %p40_p12  ;;  %s761_s7 = sshll.u32 %s1221_s30, 5 }
  0x20   : > { %1410 = sst [smem:[#allocation18_spill]] %s1218_s29  ;;  %s789_s9 = sshll.u32 %s1096_s24, 5 }
  0x21   : > { %s249_s12 = scalar_lea.hbm %s1388_s0, %s789_s9  ;;  %s244_s13 = scalar_lea.vmem [#allocation2], %s761_s7 }
  0x22   : > { %s252_s16 = sshll.u32 %s244_s13, 4  ;;  %s250_s17 = sshll.u32 %s249_s12, 4  ;;  %s253_s16 = int_to_ptr.vmem [resolvable:$true] %s252_s16  ;;  %s251_s17 = int_to_ptr.hbm [resolvable:$true] %s250_s17 }
  0x23   : > { %p1228_p2 = pnand %p837_p5, %p42_p7  ;;  %s262_s20 = sand.u32 1, %s1096_s24  }
  0x24   : > { %s764_s14 = sshll.u32 %s1221_s30, 3  ;;  %s241_s15 = scalar_lea.sflag [#allocation3], %s1221_s30 }
  0x25   : > { %s958_s2 = sshra.s32 %s251_s17, 4  ;;  %p962_p10 = pneg %p1228_p2  ;;  %s959_s2 = int_to_ptr.hbm [resolvable:$true] %s958_s2 }
  0x26   : > { %s960_s4 = scalar_lea.hbm %s959_s2, 32  ;;  %s965_s10 = scalar_lea.hbm %s1388_s0, 64 }
  0x27   : > { %p961_p9 = scmp.ne.s32.totalorder %s959_s2, %s960_s4  ;;  %p966_p0 = scmp.lt.s32.totalorder %s959_s2, %s1388_s0 }
  0x28   : > { %p967_p5 = scmp.lt.s32.totalorder %s965_s10, %s960_s4 }
  0x29   : > { %p963_p12 = pnand %p962_p10, %p961_p9 }
  0x2a   : > { %p968_p7 = por %p967_p5, %p966_p0 }
  0x2b   : > { %p964_p13 = pneg %p963_p12 }
  0x2d   : > { %p969_p11 = pnand %p968_p7, %p964_p13 }
  0x2f   : > { %972 = shalt.err (!%p969_p11)
}
  0x30   : > { %s1412_s30 = smov 8   ;;  %s1413_s13 = smov 128  }
  0x31   : > { %827 = dma.hbm_to_vmem [thread:$0]  (!%p1228_p2), %s251_s17, 512, %s253_s16, %s241_s15, %s1413_s13, %s1413_s13, %s1412_s30  }
  0x32   : > { %s765_s29 = sshll.u32 %s1096_s24, 3  ;;  %s266_s18 = scalar_lea.vmem [#allocation5], %s764_s14 }
  0x33   : > { %s270_s9 = scalar_lea.hbm %s1389_s1, %s765_s29  ;;  %s274_s11 = sshll.u32 %s266_s18, 4  ;;  %s275_s11 = int_to_ptr.vmem [resolvable:$true] %s274_s11 }
  0x34   : > { %s272_s2 = sshll.u32 %s270_s9, 4  ;;  %s263_s4 = scalar_lea.sflag [#allocation6], %s262_s20  ;;  %s273_s2 = int_to_ptr.hbm [resolvable:$true] %s272_s2 }
  0x35   : > { %s988_s10 = sshra.s32 %s273_s2, 4  ;;  %s995_s17 = scalar_lea.hbm %s1389_s1, 16  ;;  %s989_s10 = int_to_ptr.hbm [resolvable:$true] %s988_s10 }
  0x36   : > { %s990_s12 = scalar_lea.hbm %s989_s10, 8  ;;  %p996_p13 = scmp.lt.s32.totalorder %s989_s10, %s1389_s1 }
  0x37   : > { %p991_p11 = scmp.ne.s32.totalorder %s989_s10, %s990_s12  ;;  %p997_p0 = scmp.lt.s32.totalorder %s995_s17, %s990_s12 }
  0x39   : > { %p993_p9 = pnand %p991_p11, %p962_p10  ;;  %p998_p5 = por %p997_p0, %p996_p13 }
  0x3b   : > { %p994_p12 = pneg %p993_p9 }
  0x3d   : > { %p999_p7 = pnand %p998_p5, %p994_p12 }
  0x3f   : > { %1002 = shalt.err (!%p999_p7)
}
  0x40   : > { %830 = dma.hbm_to_vmem [thread:$0]  (!%p1228_p2), %s273_s2, 128, %s275_s11, %s263_s4  }
  0x41   : > { %283 = sbr.rel (%p1183_p8) target bundleno = 767 (0x2ff), region = 44  ;;  %s1269_s14 = sand.u32 (!%p1183_p8), 1, %s1088_s22  }
  0x42   : > { %s767_s18 = sshll.u32 (!%p1183_p8), %s1269_s14, 5  ;;  %s286_s20 = scalar_lea.sflag (!%p1183_p8), [#allocation3], %s1269_s14 }
  0x43   : > { %s289_s30 = scalar_lea.vmem (!%p1183_p8), [#allocation2], %s767_s18 }
  0x46   : > { %1063 = dma.done.wait (%p1170_p4), %s286_s20, 512  }
  0x47   : > { %1065 = vsyncadd (%p1170_p4), %s286_s20, 4294966784  ;;  %s295_s8 = sand.u32 1, %s1161_s25   ;;  %s768_s19 = sshll.u32 %s1269_s14, 3 }
  0x48   : > { %s296_s13 = scalar_lea.sflag [#allocation6], %s295_s8  ;;  %s1281_s7 = scalar_lea.vmem [#allocation5], %s768_s19 }
  0x49   : > { %1067 = dma.done.wait (%p1170_p4), %s296_s13, 128  }
  0x4a   : > { %1069 = vsyncadd (%p1170_p4), %s296_s13, 4294967168 }
  0x4b   : > { %1071 = dma.done.wait (%p47_p1), [#allocation6], 512  }
  0x4c   : > { %1073 = vsyncadd (%p47_p1), [#allocation6], 4294966784 }
  0x4d   : > { %1075 = dma.done.wait (%p47_p1), [#allocation9], 512  }
  0x4e   : > { %1077 = vsyncadd (%p47_p1), [#allocation9], 4294966784  ;;  %v353_v0 = vld [vmem:[#allocation7 + $0x18] sm:$0xff]  ;;  %v352_v1 = vld [vmem:[#allocation7 + $0x10] sm:$0xff]  ;;  %vm358_vm0 = vcmask 261120   ;;  %v1102_v42 = vmov 0  }
  0x4f   : > { %791 = vmatpush.msra.mxu3 %v353_v0  ;;  %383 = vmatpush.msra.mxu0 %v353_v0  ;;  %v351_v2 = vld [vmem:[#allocation7 + $0x8] sm:$0xff]  ;;  %v350_v4 = vld [vmem:[#allocation7] sm:$0xff]  ;;  %v347_v5 = vld [vmem:[%s289_s30 + $0x8] sm:$0xff]  ;;  %s343_s4 = scalar_lea.vmem [#allocation10], %s767_s18  ;;  %s790_s10 = sshll.u32 %s1161_s25, 5 }
  0x50   : > { %v349_v3 = vld [vmem:[%s289_s30 + $0x18] sm:$0xff]  ;;  %v348_v6 = vld [vmem:[%s289_s30 + $0x10] sm:$0xff]  ;;  %v346_v7 = vld [vmem:[%s289_s30] sm:$0xff]  ;;  %s637_s16 = scalar_lea.hbm %s1394_s6, %s790_s10  ;;  %s638_s17 = sshll.u32 %s343_s4, 4  ;;  %s639_s17 = int_to_ptr.vmem [resolvable:$true] %s638_s17 }
  0x51   : > { %792 = vmatpush.msra.mxu3 %v352_v1  ;;  %384 = vmatpush.msra.mxu0 %v352_v1  ;;  %v880_v8 = vld [vmem:[%s1391_s3] ss:$0 sm:$0xff]  ;;  %v575_v60 = vld [vmem:[#allocation8 + $0x18] sm:$0xff]  ;;  %s640_s23 = sshll.u32 %s637_s16, 4  ;;  %s626_s25 = scalar_lea.sflag [#allocation4], %s1269_s14  ;;  %s641_s23 = int_to_ptr.hbm [resolvable:$true] %s640_s23 }
  0x52   : > { %795 = vmatpush.msra.mxu1 %v349_v3  ;;  %v496_v41 = vld [vmem:[%s1281_s7] sm:$0xff]  ;;  %799 = vmatpush.msra.mxu2 %v575_v60  ;;  %s1032_s29 = sshra.s32 %s641_s23, 4  ;;  %s1038_s8 = scalar_lea.hbm %s1394_s6, 64  ;;  %s1033_s29 = int_to_ptr.hbm [resolvable:$true] %s1032_s29 }
  0x53   : > { %793 = vmatpush.msra.mxu3 %v351_v2  ;;  %385 = vmatpush.msra.mxu0 %v351_v2  ;;  %vm497_vm1 = vnez %v496_v41  ;;  %v574_v61 = vld [vmem:[#allocation8 + $0x10] sm:$0xff]  ;;  %v573_v2 = vld [vmem:[#allocation8 + $0x8] sm:$0xff]  ;;  %s1034_s18 = scalar_lea.hbm %s1033_s29, 32  ;;  %p1039_p2 = scmp.lt.s32.totalorder %s1033_s29, %s1394_s6 }
  0x54   : > { %796 = vmatpush.msra.mxu1 %v348_v6  ;;  %v1324_v43 = vsel %vm497_vm1, 16843009, %v1102_v42  ;;  %800 = vmatpush.msra.mxu2 %v574_v61  ;;  %p1035_p1 = scmp.ne.s32.totalorder %s1033_s29, %s1034_s18  ;;  %p1040_p10 = scmp.lt.s32.totalorder %s1038_s8, %s1034_s18 }
  0x55   : > { %794 = vmatpush.msra.mxu3 %v350_v4  ;;  %386 = vmatpush.msra.mxu0 %v350_v4  ;;  %v500_v44 = vunpack.c.1.s8 %v1324_v43  ;;  %v501_v48 = vunpack.c.2.s8 %v1324_v43  ;;  %v502_v55 = vunpack.c.3.s8 %v1324_v43 }
  0x56   : > { %773 = vmatmul.msk.f32.vlgmr.msra.gmra.mxu3 %vm358_vm0, %v347_v5  ;;  %772 = vmatmul.msk.f32.vlgmr.msra.gmra.mxu0 %vm358_vm0, %v346_v7  ;;  %p1036_p4 = pnand %p1035_p1, %p1212_p3  ;;  %p1041_p11 = por %p1040_p10, %p1039_p2 }
  0x57   : > { %797 = vmatpush.msra.mxu1 %v347_v5  ;;  %555 = vmatpush.msrb.mxu0 %v349_v3  ;;  %v505_v46 = vpack.c.b16 %v500_v44, %v500_v44  ;;  %v507_v52 = vpack.c.b16 %v501_v48, %v501_v48  ;;  %v509_v1 = vpack.c.b16 %v502_v55, %v502_v55 }
  0x58   : > { %801 = vmatpush.msra.mxu2 %v573_v2  ;;  %p1037_p8 = pneg %p1036_p4 }
  0x59   : > { %798 = vmatpush.msra.mxu1 %v346_v7  ;;  %556 = vmatpush.msrb.mxu0 %v348_v6  ;;  %v506_v47 = vpack.c.b8 %v505_v46, %v505_v46  ;;  %v508_v58 = vpack.c.b8 %v507_v52, %v507_v52 }
  0x5a   : > { %p1042_p9 = pnand %p1041_p11, %p1037_p8 }
  0x5b   : > { %557 = vmatpush.msrb.mxu0 %v347_v5  ;;  %vm512_vm2 = vnez %v506_v47  ;;  %vm513_vm6 = vnez %v508_v58 }
  0x5c   : > { %v516_v54 = vsel %vm512_vm2, 16843009, %v1102_v42 }
  0x5d   : > { %558 = vmatpush.msrb.mxu0 %v346_v7  ;;  %v520_v63 = vunpack.c.0.s8 %v516_v54 }
  0x5e   : > { %774 = vmatmul.msk.f32.gmra.mxu3 %vm358_vm0, %v348_v6 }
  0x5f   : > { %604 = vmatpush.msra.mxu0 %v575_v60  ;;  %vm524_vm8 = vcmp.ne.s32.totalorder %v520_v63, 0 }
  0x61   : > { %605 = vmatpush.msra.mxu0 %v574_v61 }
  0x63   : > { %606 = vmatpush.msra.mxu0 %v573_v2 }
  0x66   : > { %775 = vmatmul.msk.f32.gmra.mxu3 %vm358_vm0, %v349_v3 }
  0xd3   : > { %v388_v17 = vpop.f32.mrf.mxu0 }
  0xd4   : > { %v389_v19 = vadd.f32 %v880_v8, %v388_v17 }
  0xd6   : > { %v400_v20 = vsel %vm358_vm0, %v389_v19, -inf }
  0xd9   : > { %v391_v9 = vpop.f32.mrf.mxu3 }
  0xda   : > { %v392_v10 = vadd.f32 %v880_v8, %v391_v9 }
  0xdc   : > { %v403_v11 = vsel %vm358_vm0, %v392_v10, -inf }
  0xdd   : > { %404 = vmax.xlane.f32.xlu0 %v403_v11  ;;  %v510_v11 = vpack.c.b8 %v509_v1, %v509_v1 }
  0xdf   : > { %vm514_vm12 = vnez %v510_v11 }
  0xe1   : > { %v394_v12 = vpop.f32.mrf.mxu3 }
  0xe2   : > { %v395_v13 = vadd.f32 %v880_v8, %v394_v12  ;;  %v499_v12 = vunpack.c.0.s8 %v1324_v43 }
  0xe4   : > { %v406_v14 = vsel %vm358_vm0, %v395_v13, -inf }
  0xe5   : > { %407 = vmax.xlane.f32.xlu0 %v406_v14 }
  0xe9   : > { %v397_v15 = vpop.f32.mrf.mxu3 }
  0xea   : > { %v398_v16 = vadd.f32 %v880_v8, %v397_v15 }
  0xec   : > { %v409_v18 = vsel %vm358_vm0, %v398_v16, -inf }
  0xed   : > { %410 = vmax.xlane.f32.xlu1 %v409_v18 }
  0xf5   : > { %401 = vmax.xlane.f32.xlu1 %v400_v20  ;;  %v503_v20 = vpack.c.b16 %v499_v12, %v499_v12 }
 0x150   : > { %v405_v21 = vpop.xlane.xlu0 %404 }
 0x151   : > { %v413_v22 = vsub.f32 %v392_v10, %v405_v21  ;;  %v517_v10 = vsel %vm513_vm6, 16843009, %v1102_v42 }
 0x152   : > { %v521_v18 = vunpack.c.0.s8 %v517_v10 }
 0x153   : > { %v418_v23 = vmul.f32 1.442695, %v413_v22 }
 0x154   : > { %vm525_vm14 = vcmp.ne.s32.totalorder %v521_v18, 0 }
 0x155   : > { %882 = vpow2.f32 %v418_v23 }
 0x158   : > { %v408_v24 = vpop.xlane.xlu0 %407 }
 0x159   : > { %v414_v25 = vsub.f32 %v395_v13, %v408_v24 }
 0x15b   : > { %v1306_v26 = vpop.eup %882  ;;  %v420_v27 = vmul.f32 1.442695, %v414_v25 }
 0x15c   : > { %v427_v28 = vsel %vm358_vm0, %v1306_v26, 0.0 }
 0x15d   : > { %884 = vpow2.f32 %v420_v27  ;;  %428 = vadd.xlane.f32.xlu2 %v427_v28  ;;  %v518_v27 = vsel %vm514_vm12, 16843009, %v1102_v42 }
 0x160   : > { %v411_v29 = vpop.xlane.xlu1 %410 }
 0x161   : > { %v415_v30 = vsub.f32 %v398_v16, %v411_v29 }
 0x163   : > { %v1310_v31 = vpop.eup %884  ;;  %v422_v32 = vmul.f32 1.442695, %v415_v30  ;;  %v504_v30 = vpack.c.b8 %v503_v20, %v503_v20 }
 0x164   : > { %v430_v33 = vsel %vm358_vm0, %v1310_v31, 0.0 }
 0x165   : > { %886 = vpow2.f32 %v422_v32  ;;  %431 = vadd.xlane.f32.xlu2 %v430_v33 }
 0x168   : > { %v402_v34 = vpop.xlane.xlu1 %401 }
 0x169   : > { %v412_v35 = vsub.f32 %v389_v19, %v402_v34 }
 0x16b   : > { %v1314_v36 = vpop.eup %886  ;;  %v416_v37 = vmul.f32 1.442695, %v412_v35  ;;  %v522_v35 = vunpack.c.0.s8 %v518_v27 }
 0x16c   : > { %v433_v38 = vsel %vm358_vm0, %v1314_v36, 0.0 }
 0x16d   : > { %888 = vpow2.f32 %v416_v37  ;;  %434 = vadd.xlane.f32.xlu0 %v433_v38 }
 0x173   : > { %v1318_v39 = vpop.eup %888 }
 0x174   : > { %v424_v40 = vsel %vm358_vm0, %v1318_v39, 0.0 }
 0x175   : > { %425 = vadd.xlane.f32.xlu1 %v424_v40 }
 0x1d0   : > { %v429_v45 = vpop.xlane.xlu2 %428 }
 0x1d1   : > { %890 = vrcp.f32 %v429_v45  ;;  %v462_v57 = vand.u32 2147483648, %v429_v45  ;;  %v460_v59 = vand.u32 2147483647, %v429_v45  ;;  %vm456_vm4 = vweird.f32 %v429_v45 }
 0x1d3   : > { %v463_v3 = vor.u32 1.1754944e-38, %v462_v57  ;;  %vm461_vm7 = vcmp.eq.f32.partialorder %v460_v59, 8.507059e+37 }
 0x1d7   : > { %v891_v49 = vpop.eup %890 }
 0x1d8   : > { %v452_v50 = vmul.f32 %v891_v49, %v429_v45  ;;  %v432_v51 = vpop.xlane.xlu2 %431  ;;  %vm457_vm3 = vweird.f32 %v891_v49 }
 0x1d9   : > { %892 = vrcp.f32 %v432_v51  ;;  %vm458_vm5 = vmor %vm456_vm4, %vm457_vm3  ;;  %v477_v14 = vand.u32 2147483648, %v432_v51  ;;  %v475_v15 = vand.u32 2147483647, %v432_v51  ;;  %vm471_vm10 = vweird.f32 %v432_v51 }
 0x1da   : > { %v453_v53 = vsub.f32 1.0, %v452_v50  ;;  %vm511_vm3 = vnez %v504_v30 }
 0x1db   : > { %v478_v21 = vor.u32 1.1754944e-38, %v477_v14  ;;  %vm476_vm13 = vcmp.eq.f32.partialorder %v475_v15, 8.507059e+37  ;;  %v515_v46 = vsel %vm511_vm3, 16843009, %v1102_v42  ;;  %v572_v42 = vld [vmem:[#allocation8] sm:$0xff] }
 0x1dc   : > { %v454_v56 = vmul.f32 %v891_v49, %v453_v53  ;;  %802 = vmatpush.msra.mxu2 %v572_v42  ;;  %607 = vmatpush.msra.mxu0 %v572_v42 }
 0x1de   : > { %v455_v62 = vadd.f32 %v891_v49, %v454_v56 }
 0x1df   : > { %v893_v0 = vpop.eup %892 }
 0x1e0   : > { %v467_v4 = vmul.f32 %v893_v0, %v432_v51  ;;  %v435_v5 = vpop.xlane.xlu0 %434  ;;  %v459_v6 = vsel %vm458_vm5, %v891_v49, %v455_v62  ;;  %vm472_vm9 = vweird.f32 %v893_v0  ;;  %vm526_vm5 = vcmp.ne.s32.totalorder %v522_v35, 0 }
 0x1e1   : > { %894 = vrcp.f32 %v435_v5  ;;  %v464_v8 = vsel %vm461_vm7, %v463_v3, %v459_v6  ;;  %vm473_vm11 = vmor %vm471_vm10, %vm472_vm9  ;;  %v492_v28 = vand.u32 2147483648, %v435_v5  ;;  %v490_v33 = vand.u32 2147483647, %v435_v5 }
 0x1e2   : > { %v468_v7 = vsub.f32 1.0, %v467_v4  ;;  %v465_v9 = vmul.f32 %v1306_v26, %v464_v8  ;;  %vm486_vm1 = vweird.f32 %v435_v5  ;;  %v519_v51 = vunpack.c.0.s8 %v515_v46 }
 0x1e3   : > { %v493_v40 = vor.u32 1.1754944e-38, %v492_v28  ;;  %vm491_vm4 = vcmp.eq.f32.partialorder %v490_v33, 8.507059e+37 }
 0x1e4   : > { %v469_v13 = vmul.f32 %v893_v0, %v468_v7  ;;  %v528_v16 = vsel %vm524_vm8, -inf, %v465_v9  ;;  %vm523_vm10 = vcmp.ne.s32.totalorder %v519_v51, 0 }
 0x1e5   : > { %777 = vmatmul.msk.f32.vlgmr.msra.gmra.mxu1 %vm358_vm0, %v528_v16 }
 0x1e6   : > { %v470_v17 = vadd.f32 %v893_v0, %v469_v13 }
 0x1e7   : > { %v895_v19 = vpop.eup %894 }
 0x1e8   : > { %v482_v22 = vmul.f32 %v895_v19, %v435_v5  ;;  %v426_v23 = vpop.xlane.xlu1 %425  ;;  %v474_v24 = vsel %vm473_vm11, %v893_v0, %v470_v17  ;;  %vm487_vm15 = vweird.f32 %v895_v19 }
 0x1e9   : > { %896 = vrcp.f32 %v426_v23  ;;  %v479_v26 = vsel %vm476_vm13, %v478_v21, %v474_v24  ;;  %vm488_vm2 = vmor %vm486_vm1, %vm487_vm15  ;;  %v447_v47 = vand.u32 2147483648, %v426_v23  ;;  %v445_v49 = vand.u32 2147483647, %v426_v23 }
 0x1ea   : > { %v483_v25 = vsub.f32 1.0, %v482_v22  ;;  %v480_v29 = vmul.f32 %v1310_v31, %v479_v26  ;;  %vm441_vm7 = vweird.f32 %v426_v23 }
 0x1eb   : > { %v448_v53 = vor.u32 1.1754944e-38, %v447_v47  ;;  %vm446_vm9 = vcmp.eq.f32.partialorder %v445_v49, 8.507059e+37 }
 0x1ec   : > { %v484_v32 = vmul.f32 %v895_v19, %v483_v25  ;;  %v529_v34 = vsel %vm525_vm14, -inf, %v480_v29 }
 0x1ed   : > { %778 = vmatmul.msk.f32.gmra.mxu1 %vm358_vm0, %v529_v34 }
 0x1ee   : > { %v485_v37 = vadd.f32 %v895_v19, %v484_v32 }
 0x1ef   : > { %v897_v38 = vpop.eup %896 }
 0x1f0   : > { %v437_v41 = vmul.f32 %v897_v38, %v426_v23  ;;  %v489_v43 = vsel %vm488_vm2, %v895_v19, %v485_v37  ;;  %vm442_vm6 = vweird.f32 %v897_v38 }
 0x1f1   : > { %v494_v44 = vsel %vm491_vm4, %v493_v40, %v489_v43  ;;  %vm443_vm8 = vmor %vm441_vm7, %vm442_vm6 }
 0x1f2   : > { %v438_v31 = vsub.f32 1.0, %v437_v41  ;;  %v495_v45 = vmul.f32 %v1314_v36, %v494_v44 }
 0x1f4   : > { %v439_v48 = vmul.f32 %v897_v38, %v438_v31  ;;  %v530_v50 = vsel %vm526_vm5, -inf, %v495_v45 }
 0x1f5   : > { %779 = vmatmul.msk.f32.gmra.mxu1 %vm358_vm0, %v530_v50 }
 0x1f6   : > { %v440_v52 = vadd.f32 %v897_v38, %v439_v48 }
 0x1f8   : > { %v444_v54 = vsel %vm443_vm8, %v897_v38, %v440_v52 }
 0x1f9   : > { %v449_v55 = vsel %vm446_vm9, %v448_v53, %v444_v54 }
 0x1fa   : > { %v450_v36 = vmul.f32 %v1318_v39, %v449_v55  ;;  %v881_v39 = vld [vmem:[%s1393_s5] ss:$0 sm:$0xff] }
 0x1fc   : > { %v527_v56 = vsel %vm523_vm10, -inf, %v450_v36 }
 0x1fd   : > { %776 = vmatmul.msk.f32.vlgmr.msrb.gmra.mxu0 %vm358_vm0, %v527_v56 }
 0x262   : > { %v563_v57 = vpop.f32.mrf.mxu1 }
 0x263   : > { %781 = vmatmul.msk.f32.vlgmr.msra.gmra.mxu2 %vm358_vm0, %v563_v57 }
 0x26a   : > { %v566_v58 = vpop.f32.mrf.mxu1 }
 0x26b   : > { %782 = vmatmul.msk.f32.gmra.mxu2 %vm358_vm0, %v566_v58 }
 0x272   : > { %v569_v59 = vpop.f32.mrf.mxu1 }
 0x273   : > { %783 = vmatmul.msk.f32.gmra.mxu2 %vm358_vm0, %v569_v59 }
 0x27a   : > { %v560_v60 = vpop.f32.mrf.mxu0 }
 0x27b   : > { %780 = vmatmul.msk.f32.vlgmr.msra.gmra.mxu0 %vm358_vm0, %v560_v60 }
 0x2e6   : > { %v612_v61 = vpop.f32.mrf.mxu2 }
 0x2e7   : > { %v613_v62 = vadd.f32 %v881_v39, %v612_v61 }
 0x2e9   : > { %622 = vst.msk [vmem:[%s343_s4 + $0x8] sm:$0xff] %vm358_vm0, %v613_v62 }
 0x2ee   : > { %v615_v63 = vpop.f32.mrf.mxu2 }
 0x2ef   : > { %v616_v0 = vadd.f32 %v881_v39, %v615_v63 }
 0x2f1   : > { %623 = vst.msk [vmem:[%s343_s4 + $0x10] sm:$0xff] %vm358_vm0, %v616_v0 }
 0x2f6   : > { %v618_v1 = vpop.f32.mrf.mxu2 }
 0x2f7   : > { %v619_v2 = vadd.f32 %v881_v39, %v618_v1 }
 0x2f8   : > { %v609_v3 = vpop.f32.mrf.mxu0 }
 0x2f9   : > { %v610_v4 = vadd.f32 %v881_v39, %v609_v3  ;;  %624 = vst.msk [vmem:[%s343_s4 + $0x18] sm:$0xff] %vm358_vm0, %v619_v2 }
 0x2fb   : > { %621 = vst.msk [vmem:[%s343_s4] sm:$0xff] %vm358_vm0, %v610_v4 }
 0x2fc   : > { %1045 = shalt.err (!%p1042_p9)
}
 0x2fd   : > { %s1103_s14 = smov 128   ;;  %s1104_s7 = smov 8  }
 0x2fe   : > { %815 = dma.vmem_to_hbm [thread:$0]  (%p1212_p3), %s639_s17, 512, %s641_s23, %s626_s25, %s1103_s14, %s1103_s14, %s1104_s7  }
 0x2ff PF: > { %s655_s27 = sand.u32 1, %s1084_s21   ;;  %p1414_p12 = scmp.ge.s32.totalorder %s1096_s24, 2 }
 0x300   : > { %s656_s9 = scalar_lea.sflag [#allocation4], %s655_s27 }
 0x301   : > { %p832_p13 = pnand %p1414_p12, %p1175_p6 }
 0x303   : > { %p833_p0 = pneg %p832_p13 }
 0x305   : > { %1079 = dma.done.wait (%p833_p0), %s656_s9, 512  }
 0x306   : > { %1081 = vsyncadd (%p833_p0), %s656_s9, 4294966784  ;;  %s1415_s24 = sld [smem:[#allocation17_spill]]  ;;  %s1418_s21 = smov %s1088_s22 }
 0x307   : > { %s1416_s11 = sld [smem:[#allocation16_spill]] }
 0x308   : > { %s1417_s23 = sld [smem:[#allocation18_spill]] }
 0x30c   : > { %p23_p5 = scmp.ge.s32.totalorder %s1415_s24, 4  }
 0x30d   : > { %s1419_s22 = smov %s1416_s11 }
 0x30e   :  { %25 = sbr.rel (!%p23_p5) target bundleno = 11 (0xb), region = 110 }
 0x313   :  { %662 = vsyncpa [#allocation3], 1 }
 0x314   :  { %664 = vsyncpa [#allocation3 + $0x1], 1 }
 0x315   :  { %665 = vsyncpa [#allocation6], 1 }
 0x316   :  { %667 = vsyncpa [#allocation6 + $0x1], 1 }
 0x317   :  { %668 = vsyncpa [#allocation9], 1 }
 0x318   :  { %669 = vsyncpa [#allocation4], 1 }
 0x319   :  { %671 = vsyncpa [#allocation4 + $0x1], 1 }

// kernel: tpu_custom_call.1
= control target key start
LH: loop header
LB: loop body
LE: loop exit
PB: predicated region body
PF: predicated region fallthrough
CT: control target
= control target key end

     0   :  { %s1388_s0 = inlined_call_operand.hbm [shape: f32[2,32,32], index: 0, kind: input, shape index: {}]   ;;  %s1389_s1 = inlined_call_operand.hbm [shape: s8[2,32,32], index: 1, kind: input, shape index: {}]   ;;  %s1390_s2 = inlined_call_operand.hbm [shape: f32[32,32], index: 2, kind: input, shape index: {}]   ;;  %s1391_s3 = inlined_call_operand.vmem [shape: f32[1,32], index: 3, kind: input, shape index: {}]   ;;  %s1392_s4 = inlined_call_operand.hbm [shape: f32[32,32], index: 4, kind: input, shape index: {}]   ;;  %s1393_s5 = inlined_call_operand.vmem [shape: f32[1,32], index: 5, kind: input, shape index: {}]   ;;  %s1394_s6 = inlined_call_operand.hbm [shape: f32[2,32,32], index: 6, kind: output, shape index: {}]  }
   0x1   :  { %1400 = sst [smem:[#allocation19_spill]] %s1390_s2 }
   0x2   :  { %1401 = sst [smem:[#allocation20_spill]] %s1392_s4 }
   0x3   :  { %11 = vsyncpa [#allocation3], 0 }
   0x4   :  { %13 = vsyncpa [#allocation3 + $0x1], 0 }
   0x5   :  { %14 = vsyncpa [#allocation6], 0 }
   0x6   :  { %16 = vsyncpa [#allocation6 + $0x1], 0 }
   0x7   :  { %17 = vsyncpa [#allocation9], 0 }
   0x8   :  { %18 = vsyncpa [#allocation4], 0 }
   0x9   :  { %20 = vsyncpa [#allocation4 + $0x1], 0  ;;  %s1140_s21 = smov 0   ;;  %s1142_s22 = smov 0  }
   0xa   :  { %s1144_s23 = smov 0   ;;  %s1146_s24 = smov 0  }
   0xb LB: > { %1402 = sst [smem:[#allocation16_spill]] %s1092_s23  ;;  %s1161_s25 = sadd.s32 4294967295, %s1096_s24   ;;  %s1096_s24 = sphi %s1146_s24, %s1415_s24   ;;  %s1092_s23 = sphi %s1144_s23, %s1417_s23   ;;  %s1088_s22 = sphi %s1142_s22, %s1419_s22   ;;  %s1084_s21 = sphi %s1140_s21, %s1418_s21  }
   0xc   : > { %s756_s26 = sadd.s32 4294967294, %s1096_s24   ;;  %p46_p0 = scmp.ne.s32.totalorder %s1088_s22, %s1084_s21 }
   0xd   : > { %p47_p1 = scmp.eq.s32.totalorder %s1161_s25, 0  ;;  %p180_p2 = scmp.eq.s32.totalorder %s1161_s25, 1 }
   0xe   : > { %p186_p3 = scmp.eq.s32.totalorder %s756_s26, 1  ;;  %p757_p5 = scmp.ge.s32.totalorder %s1096_s24, 1 }
   0xf   : > { %p1170_p4 = por %p47_p1, %p46_p0  ;;  %p193_p7 = scmp.lt.s32.totalorder %s1096_s24, 3 }
  0x10   : > { %p1175_p6 = por %p186_p3, %p46_p0  ;;  %s1405_s2 = sld [smem:[#allocation19_spill]] }
  0x11   : > { %p1183_p8 = pnand %p757_p5, %p193_p7  ;;  %s1098_s9 = smov [#allocation7]  }
  0x12   : > { %s206_s10 = sshll.u32 %s1098_s9, 4  ;;  %s1407_s4 = sld [smem:[#allocation20_spill]]  ;;  %s207_s10 = int_to_ptr.vmem [resolvable:$true] %s206_s10 }
  0x13   : > { %p817_p9 = pneg %p1183_p8  ;;  %s1395_s14 = smov 128  }
  0x14   : > { %s1396_s15 = smov 8   ;;  %s1101_s16 = smov [#allocation8]  }
  0x15   : > { %p818_p10 = pnand %p817_p9, %p47_p1  ;;  %s223_s17 = sshll.u32 %s1101_s16, 4  ;;  %s224_s17 = int_to_ptr.vmem [resolvable:$true] %s223_s17 }
  0x16   : > { %s204_s7 = sshll.u32 %s1405_s2, 4  ;;  %s1202_s18 = sadd.s32 1, %s1096_s24   ;;  %s205_s7 = int_to_ptr.hbm [resolvable:$true] %s204_s7 }
  0x17   : > { %820 = dma.hbm_to_vmem [thread:$0]  (!%p818_p10), %s205_s7, 512, %s207_s10, [#allocation6], %s1395_s14, %s1395_s14, %s1396_s15  }
  0x18   : > { %s221_s13 = sshll.u32 %s1407_s4, 4  ;;  %1408 = sst [smem:[#allocation17_spill]] %s1202_s18  ;;  %s222_s13 = int_to_ptr.hbm [resolvable:$true] %s221_s13 }
  0x19   : > { %823 = dma.hbm_to_vmem [thread:$0]  (!%p818_p10), %s222_s13, 512, %s224_s17, [#allocation9], %s1395_s14, %s1395_s14, %s1396_s15  }
  0x1a   : > { %s33_s19 = sadd.s32 1, %s1092_s23  ;;  %s30_s20 = ssub.s32 %s1096_s24, %s1202_s18 }
  0x1b   : > { %p40_p12 = scmp.ne.s32.totalorder %s1092_s23, %s1088_s22  ;;  %p31_p13 = scmp.eq.s32.totalorder %s30_s20, 0 }
  0x1c   : > { %p41_p0 = scmp.eq.s32.totalorder %s1096_s24, 0  ;;  %p837_p5 = scmp.lt.s32.totalorder %s1096_s24, 2 }
  0x1d   : > { %p1212_p3 = por %p180_p2, %p40_p12  ;;  %s1221_s30 = sand.u32 1, %s1092_s23  }
  0x1e   : > { %s1218_s29 = scalar_select %p31_p13, %s1092_s23, %s33_s19  }
  0x1f   : > { %p42_p7 = por %p41_p0, %p40_p12  ;;  %s761_s7 = sshll.u32 %s1221_s30, 5 }
  0x20   : > { %1410 = sst [smem:[#allocation18_spill]] %s1218_s29  ;;  %s789_s9 = sshll.u32 %s1096_s24, 5 }
  0x21   : > { %s249_s12 = scalar_lea.hbm %s1388_s0, %s789_s9  ;;  %s244_s13 = scalar_lea.vmem [#allocation2], %s761_s7 }
  0x22   : > { %s252_s16 = sshll.u32 %s244_s13, 4  ;;  %s250_s17 = sshll.u32 %s249_s12, 4  ;;  %s253_s16 = int_to_ptr.vmem [resolvable:$true] %s252_s16  ;;  %s251_s17 = int_to_ptr.hbm [resolvable:$true] %s250_s17 }
  0x23   : > { %p1228_p2 = pnand %p837_p5, %p42_p7  ;;  %s262_s20 = sand.u32 1, %s1096_s24  }
  0x24   : > { %s764_s14 = sshll.u32 %s1221_s30, 3  ;;  %s241_s15 = scalar_lea.sflag [#allocation3], %s1221_s30 }
  0x25   : > { %s958_s2 = sshra.s32 %s251_s17, 4  ;;  %p962_p10 = pneg %p1228_p2  ;;  %s959_s2 = int_to_ptr.hbm [resolvable:$true] %s958_s2 }
  0x26   : > { %s960_s4 = scalar_lea.hbm %s959_s2, 32  ;;  %s965_s10 = scalar_lea.hbm %s1388_s0, 64 }
  0x27   : > { %p961_p9 = scmp.ne.s32.totalorder %s959_s2, %s960_s4  ;;  %p966_p0 = scmp.lt.s32.totalorder %s959_s2, %s1388_s0 }
  0x28   : > { %p967_p5 = scmp.lt.s32.totalorder %s965_s10, %s960_s4 }
  0x29   : > { %p963_p12 = pnand %p962_p10, %p961_p9 }
  0x2a   : > { %p968_p7 = por %p967_p5, %p966_p0 }
  0x2b   : > { %p964_p13 = pneg %p963_p12 }
  0x2d   : > { %p969_p11 = pnand %p968_p7, %p964_p13 }
  0x2f   : > { %972 = shalt.err (!%p969_p11)
}
  0x30   : > { %s1412_s30 = smov 8   ;;  %s1413_s13 = smov 128  }
  0x31   : > { %827 = dma.hbm_to_vmem [thread:$0]  (!%p1228_p2), %s251_s17, 512, %s253_s16, %s241_s15, %s1413_s13, %s1413_s13, %s1412_s30  }
  0x32   : > { %s765_s29 = sshll.u32 %s1096_s24, 3  ;;  %s266_s18 = scalar_lea.vmem [#allocation5], %s764_s14 }
  0x33   : > { %s270_s9 = scalar_lea.hbm %s1389_s1, %s765_s29  ;;  %s274_s11 = sshll.u32 %s266_s18, 4  ;;  %s275_s11 = int_to_ptr.vmem [resolvable:$true] %s274_s11 }
  0x34   : > { %s272_s2 = sshll.u32 %s270_s9, 4  ;;  %s263_s4 = scalar_lea.sflag [#allocation6], %s262_s20  ;;  %s273_s2 = int_to_ptr.hbm [resolvable:$true] %s272_s2 }
  0x35   : > { %s988_s10 = sshra.s32 %s273_s2, 4  ;;  %s995_s17 = scalar_lea.hbm %s1389_s1, 16  ;;  %s989_s10 = int_to_ptr.hbm [resolvable:$true] %s988_s10 }
  0x36   : > { %s990_s12 = scalar_lea.hbm %s989_s10, 8  ;;  %p996_p13 = scmp.lt.s32.totalorder %s989_s10, %s1389_s1 }
  0x37   : > { %p991_p11 = scmp.ne.s32.totalorder %s989_s10, %s990_s12  ;;  %p997_p0 = scmp.lt.s32.totalorder %s995_s17, %s990_s12 }
  0x39   : > { %p993_p9 = pnand %p991_p11, %p962_p10  ;;  %p998_p5 = por %p997_p0, %p996_p13 }
  0x3b   : > { %p994_p12 = pneg %p993_p9 }
  0x3d   : > { %p999_p7 = pnand %p998_p5, %p994_p12 }
  0x3f   : > { %1002 = shalt.err (!%p999_p7)
}
  0x40   : > { %830 = dma.hbm_to_vmem [thread:$0]  (!%p1228_p2), %s273_s2, 128, %s275_s11, %s263_s4  }
  0x41   : > { %283 = sbr.rel (%p1183_p8) target bundleno = 767 (0x2ff), region = 44  ;;  %s1269_s14 = sand.u32 (!%p1183_p8), 1, %s1088_s22  }
  0x42   : > { %s767_s18 = sshll.u32 (!%p1183_p8), %s1269_s14, 5  ;;  %s286_s20 = scalar_lea.sflag (!%p1183_p8), [#allocation3], %s1269_s14 }
  0x43   : > { %s289_s30 = scalar_lea.vmem (!%p1183_p8), [#allocation2], %s767_s18 }
  0x46   : > { %1063 = dma.done.wait (%p1170_p4), %s286_s20, 512  }
  0x47   : > { %1065 = vsyncadd (%p1170_p4), %s286_s20, 4294966784  ;;  %s295_s8 = sand.u32 1, %s1161_s25   ;;  %s768_s19 = sshll.u32 %s1269_s14, 3 }
  0x48   : > { %s296_s13 = scalar_lea.sflag [#allocation6], %s295_s8  ;;  %s1281_s7 = scalar_lea.vmem [#allocation5], %s768_s19 }
  0x49   : > { %1067 = dma.done.wait (%p1170_p4), %s296_s13, 128  }
  0x4a   : > { %1069 = vsyncadd (%p1170_p4), %s296_s13, 4294967168 }
  0x4b   : > { %1071 = dma.done.wait (%p47_p1), [#allocation6], 512  }
  0x4c   : > { %1073 = vsyncadd (%p47_p1), [#allocation6], 4294966784 }
  0x4d   : > { %1075 = dma.done.wait (%p47_p1), [#allocation9], 512  }
  0x4e   : > { %1077 = vsyncadd (%p47_p1), [#allocation9], 4294966784  ;;  %v353_v0 = vld [vmem:[#allocation7 + $0x18] sm:$0xff]  ;;  %v352_v1 = vld [vmem:[#allocation7 + $0x10] sm:$0xff]  ;;  %vm358_vm0 = vcmask 261120   ;;  %v1102_v42 = vmov 0  }
  0x4f   : > { %791 = vmatpush.msra.mxu3 %v353_v0  ;;  %383 = vmatpush.msra.mxu0 %v353_v0  ;;  %v351_v2 = vld [vmem:[#allocation7 + $0x8] sm:$0xff]  ;;  %v350_v4 = vld [vmem:[#allocation7] sm:$0xff]  ;;  %v347_v5 = vld [vmem:[%s289_s30 + $0x8] sm:$0xff]  ;;  %s343_s4 = scalar_lea.vmem [#allocation10], %s767_s18  ;;  %s790_s10 = sshll.u32 %s1161_s25, 5 }
  0x50   : > { %v349_v3 = vld [vmem:[%s289_s30 + $0x18] sm:$0xff]  ;;  %v348_v6 = vld [vmem:[%s289_s30 + $0x10] sm:$0xff]  ;;  %v346_v7 = vld [vmem:[%s289_s30] sm:$0xff]  ;;  %s637_s16 = scalar_lea.hbm %s1394_s6, %s790_s10  ;;  %s638_s17 = sshll.u32 %s343_s4, 4  ;;  %s639_s17 = int_to_ptr.vmem [resolvable:$true] %s638_s17 }
  0x51   : > { %792 = vmatpush.msra.mxu3 %v352_v1  ;;  %384 = vmatpush.msra.mxu0 %v352_v1  ;;  %v880_v8 = vld [vmem:[%s1391_s3] ss:$0 sm:$0xff]  ;;  %v575_v60 = vld [vmem:[#allocation8 + $0x18] sm:$0xff]  ;;  %s640_s23 = sshll.u32 %s637_s16, 4  ;;  %s626_s25 = scalar_lea.sflag [#allocation4], %s1269_s14  ;;  %s641_s23 = int_to_ptr.hbm [resolvable:$true] %s640_s23 }
  0x52   : > { %795 = vmatpush.msra.mxu1 %v349_v3  ;;  %v496_v41 = vld [vmem:[%s1281_s7] sm:$0xff]  ;;  %799 = vmatpush.msra.mxu2 %v575_v60  ;;  %s1032_s29 = sshra.s32 %s641_s23, 4  ;;  %s1038_s8 = scalar_lea.hbm %s1394_s6, 64  ;;  %s1033_s29 = int_to_ptr.hbm [resolvable:$true] %s1032_s29 }
  0x53   : > { %793 = vmatpush.msra.mxu3 %v351_v2  ;;  %385 = vmatpush.msra.mxu0 %v351_v2  ;;  %vm497_vm1 = vnez %v496_v41  ;;  %v574_v61 = vld [vmem:[#allocation8 + $0x10] sm:$0xff]  ;;  %v573_v2 = vld [vmem:[#allocation8 + $0x8] sm:$0xff]  ;;  %s1034_s18 = scalar_lea.hbm %s1033_s29, 32  ;;  %p1039_p2 = scmp.lt.s32.totalorder %s1033_s29, %s1394_s6 }
  0x54   : > { %796 = vmatpush.msra.mxu1 %v348_v6  ;;  %v1324_v43 = vsel %vm497_vm1, 16843009, %v1102_v42  ;;  %800 = vmatpush.msra.mxu2 %v574_v61  ;;  %p1035_p1 = scmp.ne.s32.totalorder %s1033_s29, %s1034_s18  ;;  %p1040_p10 = scmp.lt.s32.totalorder %s1038_s8, %s1034_s18 }
  0x55   : > { %794 = vmatpush.msra.mxu3 %v350_v4  ;;  %386 = vmatpush.msra.mxu0 %v350_v4  ;;  %v500_v44 = vunpack.c.1.s8 %v1324_v43  ;;  %v501_v48 = vunpack.c.2.s8 %v1324_v43  ;;  %v502_v55 = vunpack.c.3.s8 %v1324_v43 }
  0x56   : > { %773 = vmatmul.msk.f32.vlgmr.msra.gmra.mxu3 %vm358_vm0, %v347_v5  ;;  %772 = vmatmul.msk.f32.vlgmr.msra.gmra.mxu0 %vm358_vm0, %v346_v7  ;;  %p1036_p4 = pnand %p1035_p1, %p1212_p3  ;;  %p1041_p11 = por %p1040_p10, %p1039_p2 }
  0x57   : > { %797 = vmatpush.msra.mxu1 %v347_v5  ;;  %555 = vmatpush.msrb.mxu0 %v349_v3  ;;  %v505_v46 = vpack.c.b16 %v500_v44, %v500_v44  ;;  %v507_v52 = vpack.c.b16 %v501_v48, %v501_v48  ;;  %v509_v1 = vpack.c.b16 %v502_v55, %v502_v55 }
  0x58   : > { %801 = vmatpush.msra.mxu2 %v573_v2  ;;  %p1037_p8 = pneg %p1036_p4 }
  0x59   : > { %798 = vmatpush.msra.mxu1 %v346_v7  ;;  %556 = vmatpush.msrb.mxu0 %v348_v6  ;;  %v506_v47 = vpack.c.b8 %v505_v46, %v505_v46  ;;  %v508_v58 = vpack.c.b8 %v507_v52, %v507_v52 }
  0x5a   : > { %p1042_p9 = pnand %p1041_p11, %p1037_p8 }
  0x5b   : > { %557 = vmatpush.msrb.mxu0 %v347_v5  ;;  %vm512_vm2 = vnez %v506_v47  ;;  %vm513_vm6 = vnez %v508_v58 }
  0x5c   : > { %v516_v54 = vsel %vm512_vm2, 16843009, %v1102_v42 }
  0x5d   : > { %558 = vmatpush.msrb.mxu0 %v346_v7  ;;  %v520_v63 = vunpack.c.0.s8 %v516_v54 }
  0x5e   : > { %774 = vmatmul.msk.f32.gmra.mxu3 %vm358_vm0, %v348_v6 }
  0x5f   : > { %604 = vmatpush.msra.mxu0 %v575_v60  ;;  %vm524_vm8 = vcmp.ne.s32.totalorder %v520_v63, 0 }
  0x61   : > { %605 = vmatpush.msra.mxu0 %v574_v61 }
  0x63   : > { %606 = vmatpush.msra.mxu0 %v573_v2 }
  0x66   : > { %775 = vmatmul.msk.f32.gmra.mxu3 %vm358_vm0, %v349_v3 }
  0xd3   : > { %v388_v17 = vpop.f32.mrf.mxu0 }
  0xd4   : > { %v389_v19 = vadd.f32 %v880_v8, %v388_v17 }
  0xd6   : > { %v400_v20 = vsel %vm358_vm0, %v389_v19, -inf }
  0xd9   : > { %v391_v9 = vpop.f32.mrf.mxu3 }
  0xda   : > { %v392_v10 = vadd.f32 %v880_v8, %v391_v9 }
  0xdc   : > { %v403_v11 = vsel %vm358_vm0, %v392_v10, -inf }
  0xdd   : > { %404 = vmax.xlane.f32.xlu0 %v403_v11  ;;  %v510_v11 = vpack.c.b8 %v509_v1, %v509_v1 }
  0xdf   : > { %vm514_vm12 = vnez %v510_v11 }
  0xe1   : > { %v394_v12 = vpop.f32.mrf.mxu3 }
  0xe2   : > { %v395_v13 = vadd.f32 %v880_v8, %v394_v12  ;;  %v499_v12 = vunpack.c.0.s8 %v1324_v43 }
  0xe4   : > { %v406_v14 = vsel %vm358_vm0, %v395_v13, -inf }
  0xe5   : > { %407 = vmax.xlane.f32.xlu0 %v406_v14 }
  0xe9   : > { %v397_v15 = vpop.f32.mrf.mxu3 }
  0xea   : > { %v398_v16 = vadd.f32 %v880_v8, %v397_v15 }
  0xec   : > { %v409_v18 = vsel %vm358_vm0, %v398_v16, -inf }
  0xed   : > { %410 = vmax.xlane.f32.xlu1 %v409_v18 }
  0xf5   : > { %401 = vmax.xlane.f32.xlu1 %v400_v20  ;;  %v503_v20 = vpack.c.b16 %v499_v12, %v499_v12 }
 0x150   : > { %v405_v21 = vpop.xlane.xlu0 %404 }
 0x151   : > { %v413_v22 = vsub.f32 %v392_v10, %v405_v21  ;;  %v517_v10 = vsel %vm513_vm6, 16843009, %v1102_v42 }
 0x152   : > { %v521_v18 = vunpack.c.0.s8 %v517_v10 }
 0x153   : > { %v418_v23 = vmul.f32 1.442695, %v413_v22 }
 0x154   : > { %vm525_vm14 = vcmp.ne.s32.totalorder %v521_v18, 0 }
 0x155   : > { %882 = vpow2.f32 %v418_v23 }
 0x158   : > { %v408_v24 = vpop.xlane.xlu0 %407 }
 0x159   : > { %v414_v25 = vsub.f32 %v395_v13, %v408_v24 }
 0x15b   : > { %v1306_v26 = vpop.eup %882  ;;  %v420_v27 = vmul.f32 1.442695, %v414_v25 }
 0x15c   : > { %v427_v28 = vsel %vm358_vm0, %v1306_v26, 0.0 }
 0x15d   : > { %884 = vpow2.f32 %v420_v27  ;;  %428 = vadd.xlane.f32.xlu2 %v427_v28  ;;  %v518_v27 = vsel %vm514_vm12, 16843009, %v1102_v42 }
 0x160   : > { %v411_v29 = vpop.xlane.xlu1 %410 }
 0x161   : > { %v415_v30 = vsub.f32 %v398_v16, %v411_v29 }
 0x163   : > { %v1310_v31 = vpop.eup %884  ;;  %v422_v32 = vmul.f32 1.442695, %v415_v30  ;;  %v504_v30 = vpack.c.b8 %v503_v20, %v503_v20 }
 0x164   : > { %v430_v33 = vsel %vm358_vm0, %v1310_v31, 0.0 }
 0x165   : > { %886 = vpow2.f32 %v422_v32  ;;  %431 = vadd.xlane.f32.xlu2 %v430_v33 }
 0x168   : > { %v402_v34 = vpop.xlane.xlu1 %401 }
 0x169   : > { %v412_v35 = vsub.f32 %v389_v19, %v402_v34 }
 0x16b   : > { %v1314_v36 = vpop.eup %886  ;;  %v416_v37 = vmul.f32 1.442695, %v412_v35  ;;  %v522_v35 = vunpack.c.0.s8 %v518_v27 }
 0x16c   : > { %v433_v38 = vsel %vm358_vm0, %v1314_v36, 0.0 }
 0x16d   : > { %888 = vpow2.f32 %v416_v37  ;;  %434 = vadd.xlane.f32.xlu0 %v433_v38 }
 0x173   : > { %v1318_v39 = vpop.eup %888 }
 0x174   : > { %v424_v40 = vsel %vm358_vm0, %v1318_v39, 0.0 }
 0x175   : > { %425 = vadd.xlane.f32.xlu1 %v424_v40 }
 0x1d0   : > { %v429_v45 = vpop.xlane.xlu2 %428 }
 0x1d1   : > { %890 = vrcp.f32 %v429_v45  ;;  %v462_v57 = vand.u32 2147483648, %v429_v45  ;;  %v460_v59 = vand.u32 2147483647, %v429_v45  ;;  %vm456_vm4 = vweird.f32 %v429_v45 }
 0x1d3   : > { %v463_v3 = vor.u32 1.1754944e-38, %v462_v57  ;;  %vm461_vm7 = vcmp.eq.f32.partialorder %v460_v59, 8.507059e+37 }
 0x1d7   : > { %v891_v49 = vpop.eup %890 }
 0x1d8   : > { %v452_v50 = vmul.f32 %v891_v49, %v429_v45  ;;  %v432_v51 = vpop.xlane.xlu2 %431  ;;  %vm457_vm3 = vweird.f32 %v891_v49 }
 0x1d9   : > { %892 = vrcp.f32 %v432_v51  ;;  %vm458_vm5 = vmor %vm456_vm4, %vm457_vm3  ;;  %v477_v14 = vand.u32 2147483648, %v432_v51  ;;  %v475_v15 = vand.u32 2147483647, %v432_v51  ;;  %vm471_vm10 = vweird.f32 %v432_v51 }
 0x1da   : > { %v453_v53 = vsub.f32 1.0, %v452_v50  ;;  %vm511_vm3 = vnez %v504_v30 }
 0x1db   : > { %v478_v21 = vor.u32 1.1754944e-38, %v477_v14  ;;  %vm476_vm13 = vcmp.eq.f32.partialorder %v475_v15, 8.507059e+37  ;;  %v515_v46 = vsel %vm511_vm3, 16843009, %v1102_v42  ;;  %v572_v42 = vld [vmem:[#allocation8] sm:$0xff] }
 0x1dc   : > { %v454_v56 = vmul.f32 %v891_v49, %v453_v53  ;;  %802 = vmatpush.msra.mxu2 %v572_v42  ;;  %607 = vmatpush.msra.mxu0 %v572_v42 }
 0x1de   : > { %v455_v62 = vadd.f32 %v891_v49, %v454_v56 }
 0x1df   : > { %v893_v0 = vpop.eup %892 }
 0x1e0   : > { %v467_v4 = vmul.f32 %v893_v0, %v432_v51  ;;  %v435_v5 = vpop.xlane.xlu0 %434  ;;  %v459_v6 = vsel %vm458_vm5, %v891_v49, %v455_v62  ;;  %vm472_vm9 = vweird.f32 %v893_v0  ;;  %vm526_vm5 = vcmp.ne.s32.totalorder %v522_v35, 0 }
 0x1e1   : > { %894 = vrcp.f32 %v435_v5  ;;  %v464_v8 = vsel %vm461_vm7, %v463_v3, %v459_v6  ;;  %vm473_vm11 = vmor %vm471_vm10, %vm472_vm9  ;;  %v492_v28 = vand.u32 2147483648, %v435_v5  ;;  %v490_v33 = vand.u32 2147483647, %v435_v5 }
 0x1e2   : > { %v468_v7 = vsub.f32 1.0, %v467_v4  ;;  %v465_v9 = vmul.f32 %v1306_v26, %v464_v8  ;;  %vm486_vm1 = vweird.f32 %v435_v5  ;;  %v519_v51 = vunpack.c.0.s8 %v515_v46 }
 0x1e3   : > { %v493_v40 = vor.u32 1.1754944e-38, %v492_v28  ;;  %vm491_vm4 = vcmp.eq.f32.partialorder %v490_v33, 8.507059e+37 }
 0x1e4   : > { %v469_v13 = vmul.f32 %v893_v0, %v468_v7  ;;  %v528_v16 = vsel %vm524_vm8, -inf, %v465_v9  ;;  %vm523_vm10 = vcmp.ne.s32.totalorder %v519_v51, 0 }
 0x1e5   : > { %777 = vmatmul.msk.f32.vlgmr.msra.gmra.mxu1 %vm358_vm0, %v528_v16 }
 0x1e6   : > { %v470_v17 = vadd.f32 %v893_v0, %v469_v13 }
 0x1e7   : > { %v895_v19 = vpop.eup %894 }
 0x1e8   : > { %v482_v22 = vmul.f32 %v895_v19, %v435_v5  ;;  %v426_v23 = vpop.xlane.xlu1 %425  ;;  %v474_v24 = vsel %vm473_vm11, %v893_v0, %v470_v17  ;;  %vm487_vm15 = vweird.f32 %v895_v19 }
 0x1e9   : > { %896 = vrcp.f32 %v426_v23  ;;  %v479_v26 = vsel %vm476_vm13, %v478_v21, %v474_v24  ;;  %vm488_vm2 = vmor %vm486_vm1, %vm487_vm15  ;;  %v447_v47 = vand.u32 2147483648, %v426_v23  ;;  %v445_v49 = vand.u32 2147483647, %v426_v23 }
 0x1ea   : > { %v483_v25 = vsub.f32 1.0, %v482_v22  ;;  %v480_v29 = vmul.f32 %v1310_v31, %v479_v26  ;;  %vm441_vm7 = vweird.f32 %v426_v23 }
 0x1eb   : > { %v448_v53 = vor.u32 1.1754944e-38, %v447_v47  ;;  %vm446_vm9 = vcmp.eq.f32.partialorder %v445_v49, 8.507059e+37 }
 0x1ec   : > { %v484_v32 = vmul.f32 %v895_v19, %v483_v25  ;;  %v529_v34 = vsel %vm525_vm14, -inf, %v480_v29 }
 0x1ed   : > { %778 = vmatmul.msk.f32.gmra.mxu1 %vm358_vm0, %v529_v34 }
 0x1ee   : > { %v485_v37 = vadd.f32 %v895_v19, %v484_v32 }
 0x1ef   : > { %v897_v38 = vpop.eup %896 }
 0x1f0   : > { %v437_v41 = vmul.f32 %v897_v38, %v426_v23  ;;  %v489_v43 = vsel %vm488_vm2, %v895_v19, %v485_v37  ;;  %vm442_vm6 = vweird.f32 %v897_v38 }
 0x1f1   : > { %v494_v44 = vsel %vm491_vm4, %v493_v40, %v489_v43  ;;  %vm443_vm8 = vmor %vm441_vm7, %vm442_vm6 }
 0x1f2   : > { %v438_v31 = vsub.f32 1.0, %v437_v41  ;;  %v495_v45 = vmul.f32 %v1314_v36, %v494_v44 }
 0x1f4   : > { %v439_v48 = vmul.f32 %v897_v38, %v438_v31  ;;  %v530_v50 = vsel %vm526_vm5, -inf, %v495_v45 }
 0x1f5   : > { %779 = vmatmul.msk.f32.gmra.mxu1 %vm358_vm0, %v530_v50 }
 0x1f6   : > { %v440_v52 = vadd.f32 %v897_v38, %v439_v48 }
 0x1f8   : > { %v444_v54 = vsel %vm443_vm8, %v897_v38, %v440_v52 }
 0x1f9   : > { %v449_v55 = vsel %vm446_vm9, %v448_v53, %v444_v54 }
 0x1fa   : > { %v450_v36 = vmul.f32 %v1318_v39, %v449_v55  ;;  %v881_v39 = vld [vmem:[%s1393_s5] ss:$0 sm:$0xff] }
 0x1fc   : > { %v527_v56 = vsel %vm523_vm10, -inf, %v450_v36 }
 0x1fd   : > { %776 = vmatmul.msk.f32.vlgmr.msrb.gmra.mxu0 %vm358_vm0, %v527_v56 }
 0x262   : > { %v563_v57 = vpop.f32.mrf.mxu1 }
 0x263   : > { %781 = vmatmul.msk.f32.vlgmr.msra.gmra.mxu2 %vm358_vm0, %v563_v57 }
 0x26a   : > { %v566_v58 = vpop.f32.mrf.mxu1 }
 0x26b   : > { %782 = vmatmul.msk.f32.gmra.mxu2 %vm358_vm0, %v566_v58 }
 0x272   : > { %v569_v59 = vpop.f32.mrf.mxu1 }
 0x273   : > { %783 = vmatmul.msk.f32.gmra.mxu2 %vm358_vm0, %v569_v59 }
 0x27a   : > { %v560_v60 = vpop.f32.mrf.mxu0 }
 0x27b   : > { %780 = vmatmul.msk.f32.vlgmr.msra.gmra.mxu0 %vm358_vm0, %v560_v60 }
 0x2e6   : > { %v612_v61 = vpop.f32.mrf.mxu2 }
 0x2e7   : > { %v613_v62 = vadd.f32 %v881_v39, %v612_v61 }
 0x2e9   : > { %622 = vst.msk [vmem:[%s343_s4 + $0x8] sm:$0xff] %vm358_vm0, %v613_v62 }
 0x2ee   : > { %v615_v63 = vpop.f32.mrf.mxu2 }
 0x2ef   : > { %v616_v0 = vadd.f32 %v881_v39, %v615_v63 }
 0x2f1   : > { %623 = vst.msk [vmem:[%s343_s4 + $0x10] sm:$0xff] %vm358_vm0, %v616_v0 }
 0x2f6   : > { %v618_v1 = vpop.f32.mrf.mxu2 }
 0x2f7   : > { %v619_v2 = vadd.f32 %v881_v39, %v618_v1 }
 0x2f8   : > { %v609_v3 = vpop.f32.mrf.mxu0 }
 0x2f9   : > { %v610_v4 = vadd.f32 %v881_v39, %v609_v3  ;;  %624 = vst.msk [vmem:[%s343_s4 + $0x18] sm:$0xff] %vm358_vm0, %v619_v2 }
 0x2fb   : > { %621 = vst.msk [vmem:[%s343_s4] sm:$0xff] %vm358_vm0, %v610_v4 }
 0x2fc   : > { %1045 = shalt.err (!%p1042_p9)
}
 0x2fd   : > { %s1103_s14 = smov 128   ;;  %s1104_s7 = smov 8  }
 0x2fe   : > { %815 = dma.vmem_to_hbm [thread:$0]  (%p1212_p3), %s639_s17, 512, %s641_s23, %s626_s25, %s1103_s14, %s1103_s14, %s1104_s7  }
 0x2ff PF: > { %s655_s27 = sand.u32 1, %s1084_s21   ;;  %p1414_p12 = scmp.ge.s32.totalorder %s1096_s24, 2 }
 0x300   : > { %s656_s9 = scalar_lea.sflag [#allocation4], %s655_s27 }
 0x301   : > { %p832_p13 = pnand %p1414_p12, %p1175_p6 }
 0x303   : > { %p833_p0 = pneg %p832_p13 }
 0x305   : > { %1079 = dma.done.wait (%p833_p0), %s656_s9, 512  }
 0x306   : > { %1081 = vsyncadd (%p833_p0), %s656_s9, 4294966784  ;;  %s1415_s24 = sld [smem:[#allocation17_spill]]  ;;  %s1418_s21 = smov %s1088_s22 }
 0x307   : > { %s1416_s11 = sld [smem:[#allocation16_spill]] }
 0x308   : > { %s1417_s23 = sld [smem:[#allocation18_spill]] }
 0x30c   : > { %p23_p5 = scmp.ge.s32.totalorder %s1415_s24, 4  }
 0x30d   : > { %s1419_s22 = smov %s1416_s11 }
 0x30e   :  { %25 = sbr.rel (!%p23_p5) target bundleno = 11 (0xb), region = 110 }
 0x313   :  { %662 = vsyncpa [#allocation3], 1 }
 0x314   :  { %664 = vsyncpa [#allocation3 + $0x1], 1 }
 0x315   :  { %665 = vsyncpa [#allocation6], 1 }
 0x316   :  { %667 = vsyncpa [#allocation6 + $0x1], 1 }
 0x317   :  { %668 = vsyncpa [#allocation9], 1 }
 0x318   :  { %669 = vsyncpa [#allocation4], 1 }
 0x319   :  { %671 = vsyncpa [#allocation4 + $0x1], 1 }

</bundles_post_ra>
